<compile_context>
chip_gen: v6e
topology: v6e:2x2x1
jax: 0.10.0
libtpu: 0.0.40
codegen_flags: <defaults>
</compile_context>

<pallas_src>
import jax
import jax.numpy as jnp
from jax.experimental import pallas as pl
from jax.experimental.pallas import tpu as pltpu

LANE = 128          # TPU lane width
SUB = 16            # bf16 sublane packing -> batch tiles in multiples of 16
NEG_BIG = -1e30     # bias for padded action lanes -> softmax prob exactly 0


def _round_up(x: int, m: int) -> int:
    return ((x + m - 1) // m) * m


def _cdiv(a: int, b: int) -> int:
    return (a + b - 1) // b


def policy_kernel(x_ref,
                  w1_ref, b1_ref,
                  w2_ref, b2_ref,
                  w3_ref, b3_ref,
                  probs_ref):
    # Layer 1: bf16 MXU matmul, f32 accumulate / bias / ReLU.
    x = x_ref[...].astype(jnp.bfloat16)
    h = jnp.dot(x, w1_ref[...], preferred_element_type=jnp.float32) + b1_ref[...]
    h = jnp.maximum(h, 0.0)

    # Layer 2.
    h = jnp.dot(h.astype(jnp.bfloat16), w2_ref[...],
                preferred_element_type=jnp.float32) + b2_ref[...]
    h = jnp.maximum(h, 0.0)

    # Layer 3 + softmax in f32 (padded action lanes carry -1e30 bias -> exp == 0).
    logits = jnp.dot(h.astype(jnp.bfloat16), w3_ref[...],
                     preferred_element_type=jnp.float32) + b3_ref[...]
    m = jnp.max(logits, axis=-1, keepdims=True)
    e = jnp.exp(logits - m)
    denom = jnp.sum(e, axis=-1, keepdims=True)
    # Divide via EUP approx reciprocal (separate bundle slot; ~1e-3 rel error,
    # fine for a policy distribution — switch to e / denom for exact sums).
    probs_ref[...] = e * pl.reciprocal(denom, approx=True)


def prepare_params(params):
    """Pad + cast the weights ONCE (hoisted out of the per-call forward path).

    Weights -> bf16 [in, out] padded to lane multiples (zero padding is exact:
    ReLU(0)=0 contributes nothing). Biases -> f32; padded action-lane biases
    get -1e30 so softmax assigns them probability 0.
    """
    w1, b1 = params["w1"], params["b1"]
    w2, b2 = params["w2"], params["b2"]
    w3, b3 = params["w3"], params["b3"]
    state_dim, hidden_dim = w1.shape
    action_dim = w3.shape[1]

    s_pad = _round_up(state_dim, LANE)
    h_pad = _round_up(hidden_dim, LANE)
    a_pad = _round_up(action_dim, LANE)

    def pad2(a, rows, cols, cval=0.0):
        return jnp.pad(a, ((0, rows - a.shape[0]), (0, cols - a.shape[1])),
                       constant_values=cval)

    prepared = dict(
        w1=pad2(w1, s_pad, h_pad).astype(jnp.bfloat16),
        b1=pad2(b1, 1, h_pad).astype(jnp.float32),
        w2=pad2(w2, h_pad, h_pad).astype(jnp.bfloat16),
        b2=pad2(b2, 1, h_pad).astype(jnp.float32),
        w3=pad2(w3, h_pad, a_pad).astype(jnp.bfloat16),
        b3=pad2(b3, 1, a_pad, cval=NEG_BIG).astype(jnp.float32),
    )
    dims = dict(state_dim=state_dim, hidden_dim=hidden_dim, action_dim=action_dim,
                s_pad=s_pad, h_pad=h_pad, a_pad=a_pad)
    return prepared, dims


def _weight_spec(shape):
    # Constant index_map: the block never changes across grid steps, so a
    # single buffer suffices (default double-buffering would waste VMEM).
    try:
        return pl.BlockSpec(shape, lambda i: (0, 0), pipeline_mode=pl.Buffered(1))
    except TypeError:  # older jax without pipeline_mode kwarg
        return pl.BlockSpec(shape, lambda i: (0, 0))


def policy_forward(state, prepared, dims, *, batch_tile: int = 512):
    """state: [batch, state_dim] float32. Returns action probs [batch, action_dim]."""
    B = state.shape[0]
    state_dim = dims["state_dim"]
    action_dim = dims["action_dim"]
    s_pad, h_pad, a_pad = dims["s_pad"], dims["h_pad"], dims["a_pad"]

    # Per-call padding of the state only (weights were padded once upfront).
    x = jnp.pad(state.astype(jnp.float32), ((0, 0), (0, s_pad - state_dim)))

    # Batch tile: balanced tiles bound pad waste; >= 2 grid steps for B >= 16
    # so v7x's two TensorCores both get work (no-op on single-TC v5e/v6e).
    n_tiles = max(1, _cdiv(B, batch_tile))
    if B >= 16:
        n_tiles = max(n_tiles, 2)
    tb = _round_up(_cdiv(B, n_tiles), SUB)
    b_pad = _round_up(B, tb)
    if b_pad != B:
        x = jnp.pad(x, ((0, b_pad - B), (0, 0)))
    grid = (b_pad // tb,)

    # VMEM budget: bf16 weights (single-buffered) + f32 biases + double-buffered
    # input/output tiles + f32 intermediates, with generous margin, clamped so
    # it fits v5e (16 MiB default scoped) and v7x (32 MiB default / 64 MiB phys).
    resident = (2 * (s_pad * h_pad + h_pad * h_pad + h_pad * a_pad)   # bf16 weights
                + 4 * (2 * h_pad + a_pad)                             # f32 biases
                + 2 * 4 * tb * (s_pad + a_pad)                        # in/out x2 bufs
                + 2 * 4 * tb * h_pad)                                 # activations
    vmem_limit = int(min(max(2 * resident + (4 << 20), 16 << 20), 48 << 20))

    probs_padded = pl.pallas_call(
        policy_kernel,
        out_shape=jax.ShapeDtypeStruct((b_pad, a_pad), jnp.float32),
        grid=grid,
        in_specs=[
            pl.BlockSpec((tb, s_pad), lambda i: (i, 0)),   # state tile
            _weight_spec((s_pad, h_pad)), _weight_spec((1, h_pad)),
            _weight_spec((h_pad, h_pad)), _weight_spec((1, h_pad)),
            _weight_spec((h_pad, a_pad)), _weight_spec((1, a_pad)),
        ],
        out_specs=pl.BlockSpec((tb, a_pad), lambda i: (i, 0)),
        compiler_params=pltpu.CompilerParams(
            dimension_semantics=("parallel",),
            vmem_limit_bytes=vmem_limit),
    )(x, prepared["w1"], prepared["b1"],
      prepared["w2"], prepared["b2"],
      prepared["w3"], prepared["b3"])

    # Strip batch + action-lane padding.
    return probs_padded[:B, :action_dim]


def policy_forward_ref(state, params):
    """Pure-JAX f32 reference (identical math, no padding, no bf16)."""
    h = jax.nn.relu(state @ params["w1"] + params["b1"])
    h = jax.nn.relu(h @ params["w2"] + params["b2"])
    logits = h @ params["w3"] + params["b3"]
    return jax.nn.softmax(logits, axis=-1)


def init_params(key, state_dim, action_dim, hidden_dim):
    """PyTorch-style uniform(+/- 1/sqrt(fan_in)) init; weights stored as [in, out]."""
    def linear(k, fan_in, fan_out):
        kw, kb = jax.random.split(k)
        bound = 1.0 / jnp.sqrt(float(fan_in))
        w = jax.random.uniform(kw, (fan_in, fan_out), jnp.float32, -bound, bound)
        b = jax.random.uniform(kb, (1, fan_out), jnp.float32, -bound, bound)
        return w, b

    keys = jax.random.split(key, 3)
    w1, b1 = linear(keys[0], state_dim, hidden_dim)
    w2, b2 = linear(keys[1], hidden_dim, hidden_dim)
    w3, b3 = linear(keys[2], hidden_dim, action_dim)
    return dict(w1=w1, b1=b1, w2=w2, b2=b2, w3=w3, b3=b3)


if __name__ == "__main__":
    batch, state_dim, action_dim, hidden_dim = 2, 16, 4, 32

    key = jax.random.PRNGKey(0)
    k_params, k_state = jax.random.split(key)
    params = init_params(k_params, state_dim, action_dim, hidden_dim)
    state = jax.random.normal(k_state, (batch, state_dim), jnp.float32)

    # Weights are padded / cast once; only the state is padded per call.
    prepared, dims = prepare_params(params)

    probs = policy_forward(state, prepared, dims)
    jax.block_until_ready(probs)

    ref = policy_forward_ref(state, params)

    assert probs.shape == (batch, action_dim)
    # rows sum to 1 (tolerance accounts for EUP approx reciprocal)
    assert jnp.allclose(jnp.sum(probs, axis=-1), 1.0, atol=5e-3)
    # bf16 matmul operands vs f32 reference -> modest tolerance
    assert jnp.allclose(probs, ref, atol=2e-2, rtol=2e-2)

    print("KERNEL_OK")
</pallas_src>

<mosaic_0001>
module attributes {stable_mosaic.version = 11 : i64} {
  func.func @policy_kernel(%arg0: i32, %arg1: memref<16x128xf32, #tpu.memory_space<vmem>>, %arg2: memref<128x128xbf16, #tpu.memory_space<vmem>>, %arg3: memref<1x128xf32, #tpu.memory_space<vmem>>, %arg4: memref<128x128xbf16, #tpu.memory_space<vmem>>, %arg5: memref<1x128xf32, #tpu.memory_space<vmem>>, %arg6: memref<128x128xbf16, #tpu.memory_space<vmem>>, %arg7: memref<1x128xf32, #tpu.memory_space<vmem>>, %arg8: memref<16x128xf32, #tpu.memory_space<vmem>>) attributes {dimension_semantics = [#tpu.dimension_semantics<parallel>], iteration_bounds = array<i64: 1>, scalar_prefetch = 0 : i64, scratch_operands = 0 : i64, tpu.core_type = #tpu.core_type<tc>, window_params = [{transform_indices = @transform_0, window_bounds = array<i64: 16, 128>}, {pipeline_mode = #tpu.pipeline_mode<synchronous>, transform_indices = @transform_1, window_bounds = array<i64: 128, 128>}, {pipeline_mode = #tpu.pipeline_mode<synchronous>, transform_indices = @transform_2, window_bounds = array<i64: 1, 128>}, {pipeline_mode = #tpu.pipeline_mode<synchronous>, transform_indices = @transform_3, window_bounds = array<i64: 128, 128>}, {pipeline_mode = #tpu.pipeline_mode<synchronous>, transform_indices = @transform_4, window_bounds = array<i64: 1, 128>}, {pipeline_mode = #tpu.pipeline_mode<synchronous>, transform_indices = @transform_5, window_bounds = array<i64: 128, 128>}, {pipeline_mode = #tpu.pipeline_mode<synchronous>, transform_indices = @transform_6, window_bounds = array<i64: 1, 128>}, {transform_indices = @transform_7, window_bounds = array<i64: 16, 128>}]} {
    %c0 = arith.constant 0 : index
    %c0_0 = arith.constant 0 : index
    %0 = vector.load %arg1[%c0, %c0_0] : memref<16x128xf32, #tpu.memory_space<vmem>>, vector<16x128xf32>
    %1 = arith.truncf %0 : vector<16x128xf32> to vector<16x128xbf16>
    %c0_1 = arith.constant 0 : index
    %c0_2 = arith.constant 0 : index
    %2 = vector.load %arg2[%c0_1, %c0_2] : memref<128x128xbf16, #tpu.memory_space<vmem>>, vector<128x128xbf16>
    %cst = arith.constant dense<0.000000e+00> : vector<16x128xf32>
    %3 = tpu.matmul %1, %2, %cst {dimension_numbers = #tpu.dot_dimension_numbers<[1], [0], [0], [1], [0, 0, 1, 1], [], []>} : vector<16x128xbf16>, vector<128x128xbf16>, vector<16x128xf32> -> vector<16x128xf32>
    %c0_3 = arith.constant 0 : index
    %c0_4 = arith.constant 0 : index
    %4 = vector.load %arg3[%c0_3, %c0_4] : memref<1x128xf32, #tpu.memory_space<vmem>>, vector<1x128xf32>
    %5 = vector.broadcast %4 : vector<1x128xf32> to vector<16x128xf32>
    %6 = arith.addf %3, %5 : vector<16x128xf32>
    %cst_5 = arith.constant 0.000000e+00 : f32
    %7 = vector.broadcast %cst_5 : f32 to vector<16x128xf32>
    %8 = arith.maximumf %6, %7 : vector<16x128xf32>
    %9 = arith.truncf %8 : vector<16x128xf32> to vector<16x128xbf16>
    %c0_6 = arith.constant 0 : index
    %c0_7 = arith.constant 0 : index
    %10 = vector.load %arg4[%c0_6, %c0_7] : memref<128x128xbf16, #tpu.memory_space<vmem>>, vector<128x128xbf16>
    %cst_8 = arith.constant dense<0.000000e+00> : vector<16x128xf32>
    %11 = tpu.matmul %9, %10, %cst_8 {dimension_numbers = #tpu.dot_dimension_numbers<[1], [0], [0], [1], [0, 0, 1, 1], [], []>} : vector<16x128xbf16>, vector<128x128xbf16>, vector<16x128xf32> -> vector<16x128xf32>
    %c0_9 = arith.constant 0 : index
    %c0_10 = arith.constant 0 : index
    %12 = vector.load %arg5[%c0_9, %c0_10] : memref<1x128xf32, #tpu.memory_space<vmem>>, vector<1x128xf32>
    %13 = vector.broadcast %12 : vector<1x128xf32> to vector<16x128xf32>
    %14 = arith.addf %11, %13 : vector<16x128xf32>
    %cst_11 = arith.constant 0.000000e+00 : f32
    %15 = vector.broadcast %cst_11 : f32 to vector<16x128xf32>
    %16 = arith.maximumf %14, %15 : vector<16x128xf32>
    %17 = arith.truncf %16 : vector<16x128xf32> to vector<16x128xbf16>
    %c0_12 = arith.constant 0 : index
    %c0_13 = arith.constant 0 : index
    %18 = vector.load %arg6[%c0_12, %c0_13] : memref<128x128xbf16, #tpu.memory_space<vmem>>, vector<128x128xbf16>
    %cst_14 = arith.constant dense<0.000000e+00> : vector<16x128xf32>
    %19 = tpu.matmul %17, %18, %cst_14 {dimension_numbers = #tpu.dot_dimension_numbers<[1], [0], [0], [1], [0, 0, 1, 1], [], []>} : vector<16x128xbf16>, vector<128x128xbf16>, vector<16x128xf32> -> vector<16x128xf32>
    %c0_15 = arith.constant 0 : index
    %c0_16 = arith.constant 0 : index
    %20 = vector.load %arg7[%c0_15, %c0_16] : memref<1x128xf32, #tpu.memory_space<vmem>>, vector<1x128xf32>
    %21 = vector.broadcast %20 : vector<1x128xf32> to vector<16x128xf32>
    %22 = arith.addf %19, %21 : vector<16x128xf32>
    %cst_17 = arith.constant dense<0xFF800000> : vector<16xf32>
    %23 = vector.multi_reduction <maximumf>, %22, %cst_17 [1] : vector<16x128xf32> to vector<16xf32>
    %24 = vector.shape_cast %23 : vector<16xf32> to vector<16x1xf32>
    %25 = vector.broadcast %24 : vector<16x1xf32> to vector<16x128xf32>
    %26 = arith.subf %22, %25 : vector<16x128xf32>
    %27 = math.exp %26 : vector<16x128xf32>
    %cst_18 = arith.constant dense<0.000000e+00> : vector<16xf32>
    %28 = vector.multi_reduction <add>, %27, %cst_18 [1] : vector<16x128xf32> to vector<16xf32>
    %29 = vector.shape_cast %28 : vector<16xf32> to vector<16x1xf32>
    %30 = tpu.reciprocal %29 {approx = true} : vector<16x1xf32> -> vector<16x1xf32>
    %31 = vector.broadcast %30 : vector<16x1xf32> to vector<16x128xf32>
    %32 = arith.mulf %27, %31 : vector<16x128xf32>
    %c0_19 = arith.constant 0 : index
    %c0_20 = arith.constant 0 : index
    %33 = vector.load %arg8[%c0_19, %c0_20] : memref<16x128xf32, #tpu.memory_space<vmem>>, vector<16x128xf32>
    tpu.vector_store %arg8[%c0_19, %c0_20], %32 {strides = array<i32>} : memref<16x128xf32, #tpu.memory_space<vmem>>, vector<16x128xf32>,
    return
  }
  func.func @transform_0(%arg0: i32) -> (i32, i32) {
    %c0_i32 = arith.constant 0 : i32
    %c0_i32_0 = arith.constant 0 : i32
    return %arg0, %c0_i32 : i32, i32
  }
  func.func @transform_1(%arg0: i32) -> (i32, i32) {
    %c0_i32 = arith.constant 0 : i32
    %c0_i32_0 = arith.constant 0 : i32
    %c0_i32_1 = arith.constant 0 : i32
    return %c0_i32, %c0_i32_0 : i32, i32
  }
  func.func @transform_2(%arg0: i32) -> (i32, i32) {
    %c0_i32 = arith.constant 0 : i32
    %c0_i32_0 = arith.constant 0 : i32
    %c0_i32_1 = arith.constant 0 : i32
    return %c0_i32, %c0_i32_0 : i32, i32
  }
  func.func @transform_3(%arg0: i32) -> (i32, i32) {
    %c0_i32 = arith.constant 0 : i32
    %c0_i32_0 = arith.constant 0 : i32
    %c0_i32_1 = arith.constant 0 : i32
    return %c0_i32, %c0_i32_0 : i32, i32
  }
  func.func @transform_4(%arg0: i32) -> (i32, i32) {
    %c0_i32 = arith.constant 0 : i32
    %c0_i32_0 = arith.constant 0 : i32
    %c0_i32_1 = arith.constant 0 : i32
    return %c0_i32, %c0_i32_0 : i32, i32
  }
  func.func @transform_5(%arg0: i32) -> (i32, i32) {
    %c0_i32 = arith.constant 0 : i32
    %c0_i32_0 = arith.constant 0 : i32
    %c0_i32_1 = arith.constant 0 : i32
    return %c0_i32, %c0_i32_0 : i32, i32
  }
  func.func @transform_6(%arg0: i32) -> (i32, i32) {
    %c0_i32 = arith.constant 0 : i32
    %c0_i32_0 = arith.constant 0 : i32
    %c0_i32_1 = arith.constant 0 : i32
    return %c0_i32, %c0_i32_0 : i32, i32
  }
  func.func @transform_7(%arg0: i32) -> (i32, i32) {
    %c0_i32 = arith.constant 0 : i32
    %c0_i32_0 = arith.constant 0 : i32
    return %arg0, %c0_i32 : i32, i32
  }
}

</mosaic_0001>

<bundles_post_ra>
// kernel: tpu_custom_call.1
= control target key start
LH: loop header
LB: loop body
LE: loop exit
PB: predicated region body
PF: predicated region fallthrough
CT: control target
= control target key end

     0   :  { %12 = vsyncpa [#allocation3], 0  ;;  %s852_s0 = inlined_call_operand.hbm [shape: f32[16,128], index: 0, kind: input, shape index: {}]   ;;  %s853_s1 = inlined_call_operand.hbm [shape: bf16[128,128], index: 1, kind: input, shape index: {}]   ;;  %s854_s2 = inlined_call_operand.vmem [shape: f32[1,128], index: 2, kind: input, shape index: {}]   ;;  %s855_s3 = inlined_call_operand.hbm [shape: bf16[128,128], index: 3, kind: input, shape index: {}]   ;;  %s856_s4 = inlined_call_operand.vmem [shape: f32[1,128], index: 4, kind: input, shape index: {}]   ;;  %s857_s5 = inlined_call_operand.hbm [shape: bf16[128,128], index: 5, kind: input, shape index: {}]   ;;  %s858_s6 = inlined_call_operand.vmem [shape: f32[1,128], index: 6, kind: input, shape index: {}]   ;;  %s859_s7 = inlined_call_operand.hbm [shape: f32[16,128], index: 7, kind: output, shape index: {}]  }
   0x1   :  { %13 = vsyncpa [#allocation6], 0 }
   0x2   :  { %14 = vsyncpa [#allocation9], 0 }
   0x3   :  { %15 = vsyncpa [#allocation4], 0  ;;  %s732_s24 = smov [#allocation5]  }
   0x4   :  { %s33_s25 = sshll.u32 %s732_s24, 4  ;;  %s34_s25 = int_to_ptr.vmem [resolvable:$true] %s33_s25 }
   0x5   :  { %s632_s26 = scalar_lea.vmem %s34_s25, 1024  ;;  %p637_p1 = scmp.lt.s32.totalorder %s34_s25, %s34_s25 }
   0x6   :  { %p633_p0 = scmp.ne.s32.totalorder %s34_s25, %s632_s26  ;;  %p638_p2 = scmp.lt.s32.totalorder %s632_s26, %s632_s26 }
   0x8   :  { %p639_p3 = por %p638_p2, %p637_p1 }
   0xa   :  { %p640_p4 = pnand %p639_p3, %p633_p0 }
   0xc   :  { %643 = shalt.err (!%p640_p4)
}
   0xd   :  { %s733_s27 = smov 64   ;;  %s734_s28 = smov 4  }
   0xe   :  { %39 = dma.hbm_to_vmem [thread:$0]  %s853_s1, 1024, %s34_s25, [#allocation6], %s733_s27, %s733_s27, %s734_s28  }
   0xf   :  { %s735_s8 = smov [#allocation2]  }
  0x10   :  { %s21_s9 = sshll.u32 %s735_s8, 4  ;;  %s22_s9 = int_to_ptr.vmem [resolvable:$true] %s21_s9 }
  0x11   :  { %s652_s10 = scalar_lea.vmem %s22_s9, 256  ;;  %p657_p6 = scmp.lt.s32.totalorder %s22_s9, %s22_s9 }
  0x12   :  { %p653_p5 = scmp.ne.s32.totalorder %s22_s9, %s652_s10  ;;  %p658_p7 = scmp.lt.s32.totalorder %s652_s10, %s652_s10 }
  0x14   :  { %p659_p8 = por %p658_p7, %p657_p6 }
  0x16   :  { %p660_p9 = pnand %p659_p8, %p653_p5 }
  0x18   :  { %663 = shalt.err (!%p660_p9)
}
  0x19   :  { %s736_s11 = smov 128   ;;  %s737_s12 = smov 8  }
  0x1a   :  { %27 = dma.hbm_to_vmem [thread:$0]  %s852_s0, 256, %s22_s9, [#allocation3], %s736_s11, %s736_s11, %s737_s12  }
  0x1b   :  { %s738_s1 = smov [#allocation7]   ;;  %s739_s16 = smov [#allocation8]  }
  0x1c   :  { %s47_s15 = sshll.u32 %s738_s1, 4  ;;  %s61_s17 = sshll.u32 %s739_s16, 4  ;;  %s48_s15 = int_to_ptr.vmem [resolvable:$true] %s47_s15  ;;  %s62_s17 = int_to_ptr.vmem [resolvable:$true] %s61_s17 }
  0x1d   :  { %s672_s18 = scalar_lea.vmem %s48_s15, 1024  ;;  %p677_p11 = scmp.lt.s32.totalorder %s48_s15, %s48_s15 }
  0x1e   :  { %p673_p10 = scmp.ne.s32.totalorder %s48_s15, %s672_s18  ;;  %p678_p12 = scmp.lt.s32.totalorder %s672_s18, %s672_s18 }
  0x20   :  { %p679_p13 = por %p678_p12, %p677_p11 }
  0x22   :  { %p680_p0 = pnand %p679_p13, %p673_p10 }
  0x24   :  { %683 = shalt.err (!%p680_p0)
}
  0x25   :  { %53 = dma.hbm_to_vmem [thread:$0]  %s855_s3, 1024, %s48_s15, [#allocation6], %s733_s27, %s733_s27, %s734_s28  }
  0x26   :  { %s692_s0 = scalar_lea.vmem %s62_s17, 1024  ;;  %p697_p2 = scmp.lt.s32.totalorder %s62_s17, %s62_s17 }
  0x27   :  { %p693_p1 = scmp.ne.s32.totalorder %s62_s17, %s692_s0  ;;  %p698_p3 = scmp.lt.s32.totalorder %s692_s0, %s692_s0 }
  0x29   :  { %p699_p4 = por %p698_p3, %p697_p2 }
  0x2b   :  { %p700_p5 = pnand %p699_p4, %p693_p1 }
  0x2d   :  { %703 = shalt.err (!%p700_p5)
}
  0x2e   :  { %67 = dma.hbm_to_vmem [thread:$0]  %s857_s5, 1024, %s62_s17, [#allocation9], %s733_s27, %s733_s27, %s734_s28  }
  0x2f   :  { %724 = dma.done.wait [#allocation3], 256  }
  0x30   :  { %725 = vsyncadd [#allocation3], 4294967040 }
  0x31   :  { %726 = dma.done.wait [#allocation6], 2048  }
  0x32   :  { %727 = vsyncadd [#allocation6], 4294965248 }
  0x33   :  { %728 = dma.done.wait [#allocation9], 1024  }
  0x34   :  { %729 = vsyncadd [#allocation9], 4294966272  ;;  %v740_v0 = vmov 0.0   ;;  %vm741_vm0 = vmmov 0   ;;  %v592_v1 = vld [vmem:[#allocation5 + $0x38] sm:$0xff]   ;;  %v593_v2 = vld [vmem:[#allocation5 + $0x30] sm:$0xff]  }
  0x35   :  { %521 = vmatprep.subr.bf16.mxu0 %v740_v0  ;;  %537 = vmatprep.mubr.msk.bf16.mxu0 %vm741_vm0, %v740_v0  ;;  %v594_v3 = vld [vmem:[#allocation5 + $0x28] sm:$0xff]   ;;  %v600_v4 = vld [vmem:[#allocation7 + $0x38] sm:$0xff]   ;;  %v595_v5 = vld [vmem:[#allocation5 + $0x20] sm:$0xff]  }
  0x36   :  { %541 = vmatprep.subr.bf16.mxu1 %v740_v0  ;;  %557 = vmatprep.mubr.msk.bf16.mxu1 %vm741_vm0, %v740_v0  ;;  %v601_v6 = vld [vmem:[#allocation7 + $0x30] sm:$0xff]   ;;  %v596_v7 = vld [vmem:[#allocation5 + $0x18] sm:$0xff]   ;;  %v602_v8 = vld [vmem:[#allocation7 + $0x28] sm:$0xff]  }
  0x37   :  { %522 = vmatpush3.bf16.msra.mxu0 %v592_v1  ;;  %542 = vmatpush3.bf16.msra.mxu1 %v600_v4  ;;  %v597_v9 = vld [vmem:[#allocation5 + $0x10] sm:$0xff]   ;;  %v603_v10 = vld [vmem:[#allocation7 + $0x20] sm:$0xff]   ;;  %v598_v11 = vld [vmem:[#allocation5 + $0x8] sm:$0xff]  }
  0x38   :  { %523 = vmatprep.subr.bf16.mxu0 %v740_v0  ;;  %543 = vmatprep.subr.bf16.mxu1 %v740_v0  ;;  %v604_v12 = vld [vmem:[#allocation7 + $0x18] sm:$0xff]   ;;  %v599_v13 = vld [vmem:[#allocation5] sm:$0xff]   ;;  %v83_v14 = vld [vmem:[#allocation2] sm:$0xff] }
  0x39   :  { %v84_v15 = vld [vmem:[#allocation2 + $0x8] sm:$0xff]  ;;  %v605_v17 = vld [vmem:[#allocation7 + $0x10] sm:$0xff]   ;;  %v606_v18 = vld [vmem:[#allocation7 + $0x8] sm:$0xff]  }
  0x3a   :  { %v85_v16 = vpack.c.bf16 %v84_v15, %v83_v14  ;;  %v607_v19 = vld [vmem:[#allocation7] sm:$0xff]   ;;  %v608_v20 = vld [vmem:[#allocation8 + $0x38] sm:$0xff]   ;;  %v609_v21 = vld [vmem:[#allocation8 + $0x30] sm:$0xff]  }
  0x3b   :  { %524 = vmatpush3.bf16.msra.mxu0 %v593_v2  ;;  %544 = vmatpush3.bf16.msra.mxu1 %v601_v6  ;;  %v610_v22 = vld [vmem:[#allocation8 + $0x28] sm:$0xff]   ;;  %v611_v23 = vld [vmem:[#allocation8 + $0x20] sm:$0xff]   ;;  %v612_v24 = vld [vmem:[#allocation8 + $0x18] sm:$0xff]  }
  0x3c   :  { %525 = vmatprep.subr.bf16.mxu0 %v740_v0  ;;  %545 = vmatprep.subr.bf16.mxu1 %v740_v0  ;;  %v467_v25 = vld [vmem:[%s854_s2] ss:$0 sm:$0xff]  ;;  %v614_v36 = vld [vmem:[#allocation8 + $0x8] sm:$0xff]   ;;  %v615_v37 = vld [vmem:[#allocation8] sm:$0xff]  }
  0x3d   :  { %v613_v35 = vld [vmem:[#allocation8 + $0x10] sm:$0xff]  }
  0x3e   :  { %v476_v38 = vld [vmem:[%s856_s4] ss:$0 sm:$0xff]  ;;  %s742_s4 = smov [#allocation10]  }
  0x3f   :  { %526 = vmatpush3.bf16.msra.mxu0 %v594_v3  ;;  %546 = vmatpush3.bf16.msra.mxu1 %v602_v8  ;;  %v485_v48 = vld [vmem:[%s858_s6] ss:$0 sm:$0xff]  ;;  %s453_s6 = sshll.u32 %s742_s4, 4  ;;  %s454_s6 = int_to_ptr.vmem [resolvable:$true] %s453_s6 }
  0x40   :  { %527 = vmatprep.subr.bf16.mxu0 %v740_v0  ;;  %547 = vmatprep.subr.bf16.mxu1 %v740_v0  ;;  %s704_s26 = scalar_lea.vmem %s454_s6, 256  ;;  %p709_p7 = scmp.lt.s32.totalorder %s454_s6, %s454_s6 }
  0x41   :  { %p705_p6 = scmp.ne.s32.totalorder %s454_s6, %s704_s26  ;;  %p710_p8 = scmp.lt.s32.totalorder %s704_s26, %s704_s26 }
  0x43   :  { %528 = vmatpush3.bf16.msra.mxu0 %v595_v5  ;;  %548 = vmatpush3.bf16.msra.mxu1 %v603_v10  ;;  %p711_p9 = por %p710_p8, %p709_p7 }
  0x44   :  { %529 = vmatprep.subr.bf16.mxu0 %v740_v0  ;;  %549 = vmatprep.subr.bf16.mxu1 %v740_v0 }
  0x45   :  { %p712_p10 = pnand %p711_p9, %p705_p6 }
  0x47   :  { %530 = vmatpush3.bf16.msra.mxu0 %v596_v7  ;;  %550 = vmatpush3.bf16.msra.mxu1 %v604_v12 }
  0x48   :  { %531 = vmatprep.subr.bf16.mxu0 %v740_v0  ;;  %551 = vmatprep.subr.bf16.mxu1 %v740_v0 }
  0x4b   :  { %532 = vmatpush3.bf16.msra.mxu0 %v597_v9  ;;  %552 = vmatpush3.bf16.msra.mxu1 %v605_v17 }
  0x4c   :  { %533 = vmatprep.subr.bf16.mxu0 %v740_v0  ;;  %553 = vmatprep.subr.bf16.mxu1 %v740_v0 }
  0x4f   :  { %534 = vmatpush3.bf16.msra.mxu0 %v598_v11  ;;  %554 = vmatpush3.bf16.msra.mxu1 %v606_v18 }
  0x50   :  { %535 = vmatprep.subr.bf16.mxu0 %v740_v0  ;;  %555 = vmatprep.subr.bf16.mxu1 %v740_v0 }
  0x53   :  { %536 = vmatpush3.bf16.msra.mxu0 %v599_v13  ;;  %556 = vmatpush3.bf16.msra.mxu1 %v607_v19 }
  0x54   :  { %561 = vmatprep.subr.bf16.mxu0 %v740_v0 }
  0x56   :  { %538 = vmatmul.mubr.bf16.vlgmr.msra.gmra.mxu0 %v85_v16 }
  0x57   :  { %577 = vmatprep.mubr.msk.bf16.mxu0 %vm741_vm0, %v740_v0  ;;  %562 = vmatpush3.bf16.msra.mxu0 %v608_v20 }
  0x58   :  { %563 = vmatprep.subr.bf16.mxu0 %v740_v0 }
  0x5b   :  { %564 = vmatpush3.bf16.msra.mxu0 %v609_v21 }
  0x5c   :  { %565 = vmatprep.subr.bf16.mxu0 %v740_v0 }
  0x5f   :  { %566 = vmatpush3.bf16.msra.mxu0 %v610_v22 }
  0x60   :  { %567 = vmatprep.subr.bf16.mxu0 %v740_v0 }
  0x63   :  { %568 = vmatpush3.bf16.msra.mxu0 %v611_v23 }
  0x64   :  { %569 = vmatprep.subr.bf16.mxu0 %v740_v0 }
  0x67   :  { %570 = vmatpush3.bf16.msra.mxu0 %v612_v24 }
  0x68   :  { %571 = vmatprep.subr.bf16.mxu0 %v740_v0 }
  0x6b   :  { %572 = vmatpush3.bf16.msra.mxu0 %v613_v35 }
  0x6c   :  { %573 = vmatprep.subr.bf16.mxu0 %v740_v0 }
  0x6f   :  { %574 = vmatpush3.bf16.msra.mxu0 %v614_v36 }
  0x70   :  { %575 = vmatprep.subr.bf16.mxu0 %v740_v0 }
  0x73   :  { %576 = vmatpush3.bf16.msra.mxu0 %v615_v37 }
 0x116   :  { %v191_v26 = vpop.f32.mrf.mxu0 }
 0x117   :  { %v192_v28 = vadd.f32 %v467_v25, %v191_v26 }
 0x118   :  { %v539_v27 = vpop.f32.mrf.mxu0 }
 0x119   :  { %v198_v32 = vmax.f32 %v192_v28, 0.0 }
 0x11a   :  { %v194_v29 = vpop.f32.mrf.mxu0 }
 0x11b   :  { %v195_v30 = vadd.f32 %v467_v25, %v194_v29 }
 0x11c   :  { %v540_v31 = vpop.f32.mrf.mxu0 }
 0x11d   :  { %v199_v33 = vmax.f32 %v195_v30, 0.0 }
 0x11f   :  { %v200_v34 = vpack.c.bf16 %v199_v33, %v198_v32 }
 0x121   :  { %558 = vmatmul.mubr.bf16.vlgmr.msra.gmra.mxu1 %v200_v34 }
 0x1e1   :  { %v306_v39 = vpop.f32.mrf.mxu1 }
 0x1e2   :  { %v307_v41 = vadd.f32 %v476_v38, %v306_v39 }
 0x1e3   :  { %v559_v40 = vpop.f32.mrf.mxu1 }
 0x1e4   :  { %v313_v45 = vmax.f32 %v307_v41, 0.0 }
 0x1e5   :  { %v309_v42 = vpop.f32.mrf.mxu1 }
 0x1e6   :  { %v310_v43 = vadd.f32 %v476_v38, %v309_v42 }
 0x1e7   :  { %v560_v44 = vpop.f32.mrf.mxu1 }
 0x1e8   :  { %v314_v46 = vmax.f32 %v310_v43, 0.0 }
 0x1ea   :  { %v315_v47 = vpack.c.bf16 %v314_v46, %v313_v45 }
 0x1ec   :  { %578 = vmatmul.mubr.bf16.vlgmr.msra.gmra.mxu0 %v315_v47 }
 0x2ac   :  { %v421_v49 = vpop.f32.mrf.mxu0 }
 0x2ad   :  { %v422_v50 = vadd.f32 %v485_v48, %v421_v49 }
 0x2ae   :  { %v579_v51 = vpop.f32.mrf.mxu0 }
 0x2af   :  { %428 = vmax.xlane.f32.xlu0 %v422_v50 }
 0x2b0   :  { %v424_v52 = vpop.f32.mrf.mxu0 }
 0x2b1   :  { %v425_v53 = vadd.f32 %v485_v48, %v424_v52 }
 0x2b2   :  { %v580_v54 = vpop.f32.mrf.mxu0 }
 0x2b3   :  { %430 = vmax.xlane.f32.xlu0 %v425_v53 }
 0x338   :  { %v429_v55 = vpop.xlane.xlu0 %428 }
 0x339   :  { %v432_v56 = vsub.f32 %v422_v50, %v429_v55 }
 0x33b   :  { %v434_v57 = vmul.f32 1.442695, %v432_v56 }
 0x33c   :  { %v431_v58 = vpop.xlane.xlu0 %430 }
 0x33d   :  { %616 = vpow2.f32 %v434_v57  ;;  %v433_v59 = vsub.f32 %v425_v53, %v431_v58 }
 0x33f   :  { %v436_v60 = vmul.f32 1.442695, %v433_v59 }
 0x341   :  { %618 = vpow2.f32 %v436_v60 }
 0x34a   :  { %v617_v61 = vpop.eup %616 }
 0x34b   :  { %438 = vadd.xlane.f32.xlu1 %v617_v61 }
 0x34e   :  { %v619_v62 = vpop.eup %618 }
 0x34f   :  { %440 = vadd.xlane.f32.xlu1 %v619_v62 }
 0x3d4   :  { %v439_v63 = vpop.xlane.xlu1 %438 }
 0x3d5   :  { %620 = vrcp.f32 %v439_v63 }
 0x3d8   :  { %v441_v0 = vpop.xlane.xlu1 %440 }
 0x3d9   :  { %622 = vrcp.f32 %v441_v0 }
 0x3e2   :  { %v621_v1 = vpop.eup %620 }
 0x3e3   :  { %v444_v2 = vmul.f32 %v621_v1, %v617_v61 }
 0x3e5   :  { %446 = vst [vmem:[#allocation10] sm:$0xff] %v444_v2 }
 0x3e6   :  { %v623_v3 = vpop.eup %622 }
 0x3e7   :  { %v445_v4 = vmul.f32 %v623_v3, %v619_v62 }
 0x3e9   :  { %447 = vst [vmem:[#allocation10 + $0x8] sm:$0xff] %v445_v4 }
 0x3ea   :  { %715 = shalt.err (!%p712_p10)
}
 0x3eb   :  { %459 = dma.vmem_to_hbm [thread:$0]  %s454_s6, 256, %s859_s7, [#allocation4], %s736_s11, %s736_s11, %s737_s12  }
 0x3ec   :  { %730 = dma.done.wait [#allocation4], 256  }
 0x3ed   :  { %731 = vsyncadd [#allocation4], 4294967040 }
 0x3ee   :  { %463 = vsyncpa [#allocation3], 1 }
 0x3ef   :  { %464 = vsyncpa [#allocation6], 1 }
 0x3f0   :  { %465 = vsyncpa [#allocation9], 1 }
 0x3f1   :  { %466 = vsyncpa [#allocation4], 1 }

</bundles_post_ra>
